<compile_context>
chip_gen: v5e
topology: v5e:2x2
jax: 0.10.0
libtpu: 0.0.40
codegen_flags: <defaults>
</compile_context>

<pallas_src>
import math

import jax
import jax.numpy as jnp
from jax.experimental import pallas as pl
from jax.experimental.pallas import tpu as pltpu


_LANE = 128


def _round_up(x, m):
    return (x + m - 1) // m * m


def _pick_block(n, step, cap):
    """Largest multiple of `step` that divides n and is <= cap; fallback: n
    (a full-extent block is always layout-legal)."""
    b = min(cap, (n // step) * step)
    while b >= step:
        if n % b == 0:
            return b
        b -= step
    return n


def _make_kernel(skip: bool, bias: bool, relu: bool, cast_dtype, fuse_bias: bool):
    """Fused MLP-cell kernel specialized on the static config flags."""

    def kernel(*refs):
        # ref order: xl, [xr], wl_t, [wr_t], [bsum | bl, [br]], out
        refs = list(refs)
        o_ref = refs.pop()
        xl_ref = refs.pop(0)
        xr_ref = refs.pop(0) if skip else None
        wl_ref = refs.pop(0)
        wr_ref = refs.pop(0) if skip else None
        bl_ref = br_ref = bsum_ref = None
        if bias:
            if fuse_bias:
                bsum_ref = refs.pop(0)
            else:
                bl_ref = refs.pop(0)
                if skip:
                    br_ref = refs.pop(0)

        # Left branch: (bn, C) @ (C, tk) on the MXU, f32 accumulation.
        xl = xl_ref[...]
        if cast_dtype is not None:
            xl = xl.astype(cast_dtype)            # in-kernel cast (VPU, hidden)
        y = jnp.dot(xl, wl_ref[...], preferred_element_type=jnp.float32)

        if not skip:
            if bias:
                y = y + bl_ref[...]               # (1, tk) broadcasts over rows
            if relu:
                y = jnp.maximum(y, 0.0)
            o_ref[...] = y.astype(o_ref.dtype)
            return

        # Right (skip) branch, accumulated into the left result.
        xr = xr_ref[...]
        if cast_dtype is not None:
            xr = xr.astype(cast_dtype)
        yr = jnp.dot(xr, wr_ref[...], preferred_element_type=jnp.float32)

        if relu:
            if bias:
                y = y + bl_ref[...]
                yr = yr + br_ref[...]
            y = jnp.maximum(y, 0.0) + jnp.maximum(yr, 0.0)
        else:
            # identity activation commutes with the skip-sum: single bias add
            y = y + yr
            if bias:
                y = y + bsum_ref[...]
        o_ref[...] = y.astype(o_ref.dtype)

    return kernel


def prepare_mlpcell_params(weight_l, bias_l=None, weight_r=None, bias_r=None,
                           *, compute_dtype=None):
    """One-time conversion of PyTorch-style (K, C) weights into the kernel layout:
    (C, K_pad) with K padded to a multiple of 128 lanes (lane-dense stores),
    optionally cast to compute_dtype (e.g. bf16).  Biases become (1, K_pad) f32;
    bias_sum = bias_l + bias_r is also prepped once for the activation==0 skip path."""
    K, C = weight_l.shape
    K_pad = _round_up(K, _LANE)

    def prep_w(w):
        if w is None:
            return None
        wt = jnp.swapaxes(w, 0, 1)                   # (C, K)
        if K_pad != K:
            wt = jnp.pad(wt, ((0, 0), (0, K_pad - K)))
        if compute_dtype is not None:
            wt = wt.astype(compute_dtype)
        return wt

    def prep_b(b):
        if b is None:
            return None
        bb = b.astype(jnp.float32)
        if K_pad != K:
            bb = jnp.pad(bb, (0, K_pad - K))
        return bb.reshape(1, K_pad)

    bias_sum = None
    if bias_l is not None and bias_r is not None:
        bias_sum = prep_b(bias_l.astype(jnp.float32) + bias_r.astype(jnp.float32))

    return dict(weight_l_t=prep_w(weight_l), bias_l=prep_b(bias_l),
                weight_r_t=prep_w(weight_r), bias_r=prep_b(bias_r),
                bias_sum=bias_sum, K=K, K_pad=K_pad, compute_dtype=compute_dtype)


def xsmm_mlpcell_forward(params, input_l, input_r=None, *, activation=0,
                         bn=None, tk=None, out_dtype=None, keep_padded=False):
    """Pallas-TPU implementation of XsmmMLPCell.forward (eval mode)."""
    skip = input_r is not None
    has_bias = params["bias_l"] is not None
    relu = activation != 0
    K, K_pad = params["K"], params["K_pad"]
    cdt = params["compute_dtype"]
    N, C = input_l.shape
    if out_dtype is None:
        out_dtype = input_l.dtype

    wl, wr = params["weight_l_t"], params["weight_r_t"]
    bl, br, bsum = params["bias_l"], params["bias_r"], params["bias_sum"]

    # Cast happens INSIDE the kernel; only needed if the activations are not
    # already in the compute dtype.
    cast_dtype = cdt if (cdt is not None and input_l.dtype != cdt) else None
    fuse_bias = skip and has_bias and not relu

    x_item = jnp.dtype(input_l.dtype).itemsize
    w_item = jnp.dtype(wl.dtype).itemsize
    o_item = jnp.dtype(out_dtype).itemsize
    n_br = 2 if skip else 1

    # ---- block sizes -----------------------------------------------------------
    sub = 16 if input_l.dtype == jnp.bfloat16 else 8
    if bn is None:
        bn = _pick_block(N, sub, 1024)
    assert N % bn == 0

    if tk is None:
        # Weights comfortably VMEM-resident -> single K tile, x streamed once.
        if n_br * C * K_pad * w_item <= 8 * 2 ** 20:
            tk = K_pad
        else:
            tk = min(K_pad, 512)
            while K_pad % tk:
                tk -= _LANE
    assert K_pad % tk == 0
    nk = K_pad // tk

    # ---- specs: grid = (N blocks, K tiles); K innermost so the (bn, C) activation
    # block keeps the same block index across the K sweep and stays VMEM-resident
    # (each x element is DMAed from HBM exactly once). ----------------------------
    x_spec = pl.BlockSpec((bn, C), lambda i, j: (i, 0))
    w_spec = pl.BlockSpec((C, tk), lambda i, j: (0, j))
    b_spec = pl.BlockSpec((1, tk), lambda i, j: (0, j))
    out_spec = pl.BlockSpec((bn, tk), lambda i, j: (i, j))

    args, in_specs = [input_l], [x_spec]
    if skip:
        args.append(input_r); in_specs.append(x_spec)
    args.append(wl); in_specs.append(w_spec)
    if skip:
        args.append(wr); in_specs.append(w_spec)
    if has_bias:
        if fuse_bias:
            args.append(bsum); in_specs.append(b_spec)
        else:
            args.append(bl); in_specs.append(b_spec)
            if skip:
                args.append(br); in_specs.append(b_spec)

    # ---- VMEM budget: true double-buffering of every BlockSpec'd tile + output,
    # capped by the actual chip capacity (v7x 64 MiB / v5e,v6e 128 MiB) w/ headroom.
    needed = 2 * n_br * bn * C * x_item            # activation tiles
    needed += 2 * n_br * C * tk * w_item           # weight tiles
    if has_bias:
        needed += 2 * (1 if fuse_bias else n_br) * tk * 4
    needed += 2 * bn * tk * o_item                 # output tiles
    try:
        vmem_cap = pltpu.get_tpu_info().vmem_capacity_bytes
    except Exception:                              # pragma: no cover
        vmem_cap = 64 * 2 ** 20
    cap = int(vmem_cap * 0.75)                     # ~25% headroom for compiler scratch
    vmem_limit = int(min(cap, max(32 * 2 ** 20, int(needed * 1.5))))
    # TODO(synk): if `needed` ever exceeds `cap` (huge C on v7x), add a C-reduction
    #             grid axis with an f32 accumulator instead of shrinking bn.

    kernel = _make_kernel(skip, has_bias, relu, cast_dtype, fuse_bias)
    out = pl.pallas_call(
        kernel,
        out_shape=jax.ShapeDtypeStruct((N, K_pad), out_dtype),
        grid=(N // bn, nk),
        in_specs=in_specs,
        out_specs=out_spec,
        compiler_params=pltpu.CompilerParams(
            dimension_semantics=("parallel", "parallel"),
            vmem_limit_bytes=vmem_limit),
    )(*args)

    if K_pad != K and not keep_padded:
        # NOTE: this slice is one extra read+write of the output in XLA; pass
        # keep_padded=True if the consumer can take the lane-dense (N, K_pad) layout.
        out = out[:, :K]
    return out


def _init_params(key, C, K, skip, bias):
    """Deterministic init matching XsmmMLPCell.reset_parameters:
       kaiming_uniform_(a=sqrt(5)) on (K, C) -> U(-1/sqrt(C), 1/sqrt(C));
       biases -> U(-1/sqrt(C), 1/sqrt(C))."""
    bound_w = math.sqrt(6.0 / ((1.0 + 5.0) * C))     # == 1/sqrt(C)
    bound_b = 1.0 / math.sqrt(C)
    ks = jax.random.split(key, 4)
    w_l = jax.random.uniform(ks[0], (K, C), jnp.float32, -bound_w, bound_w)
    b_l = jax.random.uniform(ks[1], (K,), jnp.float32, -bound_b, bound_b) if bias else None
    w_r = jax.random.uniform(ks[2], (K, C), jnp.float32, -bound_w, bound_w) if skip else None
    b_r = jax.random.uniform(ks[3], (K,), jnp.float32, -bound_b, bound_b) if (skip and bias) else None
    return w_l, b_l, w_r, b_r


if __name__ == "__main__":
    # Small config consistent with the module: C=32, K=32, bias=True, skip=True.
    N, C, K = 64, 32, 32
    key = jax.random.PRNGKey(0)
    k_xl, k_xr, k_p = jax.random.split(key, 3)
    x_l = jax.random.normal(k_xl, (N, C), jnp.float32)
    x_r = jax.random.normal(k_xr, (N, C), jnp.float32)
    w_l, b_l, w_r, b_r = _init_params(k_p, C, K, skip=True, bias=True)

    def ref_fn(activation, skip, compute_dtype):
        def r(a):
            return a.astype(compute_dtype).astype(jnp.float32) if compute_dtype else a
        yl = r(x_l) @ r(w_l).T + b_l[None, :]
        if activation != 0:
            yl = jnp.maximum(yl, 0.0)
        if not skip:
            return yl
        yr = r(x_r) @ r(w_r).T + b_r[None, :]
        if activation != 0:
            yr = jnp.maximum(yr, 0.0)
        return yl + yr

    # bf16 compute path: weights prepped (transposed, K padded to 128, cast) once.
    params_bf16 = prepare_mlpcell_params(w_l, b_l, w_r, b_r, compute_dtype=jnp.bfloat16)

    # (1) skip + per-branch ReLU (activation=1)
    out1 = jax.block_until_ready(
        xsmm_mlpcell_forward(params_bf16, x_l, x_r, activation=1))
    assert out1.shape == (N, K)
    assert jnp.allclose(out1, ref_fn(1, True, jnp.bfloat16), atol=1e-3, rtol=1e-3)

    # (2) skip, no activation -> fused-bias single-accumulator path
    out2 = jax.block_until_ready(
        xsmm_mlpcell_forward(params_bf16, x_l, x_r, activation=0))
    assert jnp.allclose(out2, ref_fn(0, True, jnp.bfloat16), atol=1e-3, rtol=1e-3)

    # (3) no skip, ReLU
    out3 = jax.block_until_ready(
        xsmm_mlpcell_forward(params_bf16, x_l, activation=1))
    assert jnp.allclose(out3, ref_fn(1, False, jnp.bfloat16), atol=1e-3, rtol=1e-3)

    # (4) pure f32 path (no in-kernel cast), skip + ReLU, padded output kept
    params_f32 = prepare_mlpcell_params(w_l, b_l, w_r, b_r, compute_dtype=None)
    out4 = jax.block_until_ready(
        xsmm_mlpcell_forward(params_f32, x_l, x_r, activation=1, keep_padded=True))
    assert out4.shape == (N, params_f32["K_pad"])
    assert jnp.allclose(out4[:, :K], ref_fn(1, True, None), atol=1e-5, rtol=1e-5)
    assert jnp.allclose(out4[:, K:], 0.0)   # padded K columns stay zero

    print("KERNEL_OK")
</pallas_src>

<mosaic_0001>
module attributes {stable_mosaic.version = 11 : i64} {
  func.func @kernel(%arg0: i32, %arg1: i32, %arg2: memref<64x32xf32, #tpu.memory_space<vmem>>, %arg3: memref<64x32xf32, #tpu.memory_space<vmem>>, %arg4: memref<32x128xbf16, #tpu.memory_space<vmem>>, %arg5: memref<32x128xbf16, #tpu.memory_space<vmem>>, %arg6: memref<1x128xf32, #tpu.memory_space<vmem>>, %arg7: memref<1x128xf32, #tpu.memory_space<vmem>>, %arg8: memref<64x128xf32, #tpu.memory_space<vmem>>) attributes {dimension_semantics = [#tpu.dimension_semantics<parallel>, #tpu.dimension_semantics<parallel>], iteration_bounds = array<i64: 1, 1>, scalar_prefetch = 0 : i64, scratch_operands = 0 : i64, tpu.core_type = #tpu.core_type<tc>, window_params = [{transform_indices = @transform_0, window_bounds = array<i64: 64, 32>}, {transform_indices = @transform_1, window_bounds = array<i64: 64, 32>}, {transform_indices = @transform_2, window_bounds = array<i64: 32, 128>}, {transform_indices = @transform_3, window_bounds = array<i64: 32, 128>}, {transform_indices = @transform_4, window_bounds = array<i64: 1, 128>}, {transform_indices = @transform_5, window_bounds = array<i64: 1, 128>}, {transform_indices = @transform_6, window_bounds = array<i64: 64, 128>}]} {
    %c0 = arith.constant 0 : index
    %c0_0 = arith.constant 0 : index
    %0 = vector.load %arg2[%c0, %c0_0] : memref<64x32xf32, #tpu.memory_space<vmem>>, vector<64x32xf32>
    %1 = arith.truncf %0 : vector<64x32xf32> to vector<64x32xbf16>
    %c0_1 = arith.constant 0 : index
    %c0_2 = arith.constant 0 : index
    %2 = vector.load %arg4[%c0_1, %c0_2] : memref<32x128xbf16, #tpu.memory_space<vmem>>, vector<32x128xbf16>
    %cst = arith.constant dense<0.000000e+00> : vector<64x128xf32>
    %3 = tpu.matmul %1, %2, %cst {dimension_numbers = #tpu.dot_dimension_numbers<[1], [0], [0], [1], [0, 0, 1, 1], [], []>} : vector<64x32xbf16>, vector<32x128xbf16>, vector<64x128xf32> -> vector<64x128xf32>
    %c0_3 = arith.constant 0 : index
    %c0_4 = arith.constant 0 : index
    %4 = vector.load %arg3[%c0_3, %c0_4] : memref<64x32xf32, #tpu.memory_space<vmem>>, vector<64x32xf32>
    %5 = arith.truncf %4 : vector<64x32xf32> to vector<64x32xbf16>
    %c0_5 = arith.constant 0 : index
    %c0_6 = arith.constant 0 : index
    %6 = vector.load %arg5[%c0_5, %c0_6] : memref<32x128xbf16, #tpu.memory_space<vmem>>, vector<32x128xbf16>
    %cst_7 = arith.constant dense<0.000000e+00> : vector<64x128xf32>
    %7 = tpu.matmul %5, %6, %cst_7 {dimension_numbers = #tpu.dot_dimension_numbers<[1], [0], [0], [1], [0, 0, 1, 1], [], []>} : vector<64x32xbf16>, vector<32x128xbf16>, vector<64x128xf32> -> vector<64x128xf32>
    %c0_8 = arith.constant 0 : index
    %c0_9 = arith.constant 0 : index
    %8 = vector.load %arg6[%c0_8, %c0_9] : memref<1x128xf32, #tpu.memory_space<vmem>>, vector<1x128xf32>
    %9 = vector.broadcast %8 : vector<1x128xf32> to vector<64x128xf32>
    %10 = arith.addf %3, %9 : vector<64x128xf32>
    %c0_10 = arith.constant 0 : index
    %c0_11 = arith.constant 0 : index
    %11 = vector.load %arg7[%c0_10, %c0_11] : memref<1x128xf32, #tpu.memory_space<vmem>>, vector<1x128xf32>
    %12 = vector.broadcast %11 : vector<1x128xf32> to vector<64x128xf32>
    %13 = arith.addf %7, %12 : vector<64x128xf32>
    %cst_12 = arith.constant 0.000000e+00 : f32
    %14 = vector.broadcast %cst_12 : f32 to vector<64x128xf32>
    %15 = arith.maximumf %10, %14 : vector<64x128xf32>
    %cst_13 = arith.constant 0.000000e+00 : f32
    %16 = vector.broadcast %cst_13 : f32 to vector<64x128xf32>
    %17 = arith.maximumf %13, %16 : vector<64x128xf32>
    %18 = arith.addf %15, %17 : vector<64x128xf32>
    %c0_14 = arith.constant 0 : index
    %c0_15 = arith.constant 0 : index
    %19 = vector.load %arg8[%c0_14, %c0_15] : memref<64x128xf32, #tpu.memory_space<vmem>>, vector<64x128xf32>
    tpu.vector_store %arg8[%c0_14, %c0_15], %18 {strides = array<i32>} : memref<64x128xf32, #tpu.memory_space<vmem>>, vector<64x128xf32>,
    return
  }
  func.func @transform_0(%arg0: i32, %arg1: i32) -> (i32, i32) {
    %c0_i32 = arith.constant 0 : i32
    %c0_i32_0 = arith.constant 0 : i32
    return %arg0, %c0_i32 : i32, i32
  }
  func.func @transform_1(%arg0: i32, %arg1: i32) -> (i32, i32) {
    %c0_i32 = arith.constant 0 : i32
    %c0_i32_0 = arith.constant 0 : i32
    return %arg0, %c0_i32 : i32, i32
  }
  func.func @transform_2(%arg0: i32, %arg1: i32) -> (i32, i32) {
    %c0_i32 = arith.constant 0 : i32
    %c0_i32_0 = arith.constant 0 : i32
    return %c0_i32, %arg1 : i32, i32
  }
  func.func @transform_3(%arg0: i32, %arg1: i32) -> (i32, i32) {
    %c0_i32 = arith.constant 0 : i32
    %c0_i32_0 = arith.constant 0 : i32
    return %c0_i32, %arg1 : i32, i32
  }
  func.func @transform_4(%arg0: i32, %arg1: i32) -> (i32, i32) {
    %c0_i32 = arith.constant 0 : i32
    %c0_i32_0 = arith.constant 0 : i32
    return %c0_i32, %arg1 : i32, i32
  }
  func.func @transform_5(%arg0: i32, %arg1: i32) -> (i32, i32) {
    %c0_i32 = arith.constant 0 : i32
    %c0_i32_0 = arith.constant 0 : i32
    return %c0_i32, %arg1 : i32, i32
  }
  func.func @transform_6(%arg0: i32, %arg1: i32) -> (i32, i32) {
    %c0_i32 = arith.constant 0 : i32
    return %arg0, %arg1 : i32, i32
  }
}

</mosaic_0001>

<bundles_post_ra>
// kernel: tpu_custom_call.1
= control target key start
LH: loop header
LB: loop body
LE: loop exit
PB: predicated region body
PF: predicated region fallthrough
CT: control target
= control target key end

     0   :  { %vm73_vm0 = vcmask 261120   ;;  %s400_s0 = inlined_call_operand.vmem [shape: f32[64,32], index: 0, kind: input, shape index: {}]   ;;  %s401_s1 = inlined_call_operand.vmem [shape: f32[64,32], index: 1, kind: input, shape index: {}]   ;;  %s402_s2 = inlined_call_operand.vmem [shape: bf16[32,128], index: 2, kind: input, shape index: {}]   ;;  %s403_s3 = inlined_call_operand.vmem [shape: bf16[32,128], index: 3, kind: input, shape index: {}]   ;;  %s404_s4 = inlined_call_operand.vmem [shape: f32[1,128], index: 4, kind: input, shape index: {}]   ;;  %s405_s5 = inlined_call_operand.vmem [shape: f32[1,128], index: 5, kind: input, shape index: {}]   ;;  %s406_s6 = inlined_call_operand.hbm [shape: f32[64,128], index: 6, kind: output, shape index: {}]  }
   0x1   :  { %v247_v0 = vld [vmem:[%s402_s2 + $0x8] sm:$0xff]  ;;  %v246_v2 = vld [vmem:[%s402_s2] sm:$0xff] }
   0x2   :  { %v249_v1 = vld [vmem:[%s403_s3 + $0x8] sm:$0xff]  ;;  %v248_v3 = vld [vmem:[%s403_s3] sm:$0xff]  ;;  %92 = vmatpush.bf16.msra.mxu0 %v247_v0  ;;  %250 = vmatpush.bf16.msra.mxu2 %v247_v0 }
   0x3   :  { %v25_v4 = vld [vmem:[%s400_s0] sm:$0xff]  ;;  %v26_v5 = vld [vmem:[%s400_s0 + $0x8] sm:$0xff]  ;;  %149 = vmatpush.bf16.msra.mxu1 %v249_v1  ;;  %252 = vmatpush.bf16.msra.mxu3 %v249_v1 }
   0x4   :  { %v29_v6 = vld [vmem:[%s400_s0 + $0x20] sm:$0xff]  ;;  %v30_v7 = vld [vmem:[%s400_s0 + $0x28] sm:$0xff]  ;;  %v33_v12 = vpack.c.bf16 %v26_v5, %v25_v4 }
   0x5   :  { %v41_v8 = vld [vmem:[%s401_s1] sm:$0xff]  ;;  %v42_v9 = vld [vmem:[%s401_s1 + $0x8] sm:$0xff]  ;;  %v35_v13 = vpack.c.bf16 %v30_v7, %v29_v6 }
   0x6   :  { %v45_v10 = vld [vmem:[%s401_s1 + $0x20] sm:$0xff]  ;;  %v46_v11 = vld [vmem:[%s401_s1 + $0x28] sm:$0xff]  ;;  %93 = vmatpush.bf16.msra.mxu0 %v246_v2  ;;  %251 = vmatpush.bf16.msra.mxu2 %v246_v2  ;;  %v49_v14 = vpack.c.bf16 %v42_v9, %v41_v8 }
   0x7   :  { %v51_v15 = vpack.c.bf16 %v46_v11, %v45_v10  ;;  %150 = vmatpush.bf16.msra.mxu1 %v248_v3  ;;  %253 = vmatpush.bf16.msra.mxu3 %v248_v3 }
   0x8   :  { %11 = vsyncpa [#allocation3], 0  ;;  %v27_v16 = vld [vmem:[%s400_s0 + $0x10] sm:$0xff]  ;;  %v28_v17 = vld [vmem:[%s400_s0 + $0x18] sm:$0xff]  ;;  %s210_s13 = sshll.u32 %s406_s6, 4  ;;  %s286_s14 = smov 128   ;;  %s211_s13 = int_to_ptr.hbm [resolvable:$true] %s210_s13 }
   0x9   :  { %230 = vmatmul.msk.bf16.vlgmr.msra.gmra.mxu0 %vm73_vm0, %v33_v12  ;;  %232 = vmatmul.msk.bf16.vlgmr.msra.gmra.mxu2 %vm73_vm0, %v35_v13  ;;  %v31_v18 = vld [vmem:[%s400_s0 + $0x30] sm:$0xff]  ;;  %v32_v19 = vld [vmem:[%s400_s0 + $0x38] sm:$0xff]  ;;  %v34_v24 = vpack.c.bf16 %v28_v17, %v27_v16  ;;  %v257_v28 = vld [vmem:[%s404_s4] ss:$0 sm:$0xff]  ;;  %s287_s15 = smov 8  }
   0xa   :  { %242 = vmatmul.msk.bf16.vlgmr.msra.gmra.mxu1 %vm73_vm0, %v49_v14  ;;  %244 = vmatmul.msk.bf16.vlgmr.msra.gmra.mxu3 %vm73_vm0, %v51_v15  ;;  %v43_v20 = vld [vmem:[%s401_s1 + $0x10] sm:$0xff]  ;;  %v44_v21 = vld [vmem:[%s401_s1 + $0x18] sm:$0xff]  ;;  %v36_v25 = vpack.c.bf16 %v32_v19, %v31_v18  ;;  %v258_v29 = vld [vmem:[%s405_s5] ss:$0 sm:$0xff] }
   0xb   :  { %v47_v22 = vld [vmem:[%s401_s1 + $0x30] sm:$0xff]  ;;  %v48_v23 = vld [vmem:[%s401_s1 + $0x38] sm:$0xff]  ;;  %v50_v26 = vpack.c.bf16 %v44_v21, %v43_v20  ;;  %s285_s1 = smov [#allocation2]  }
   0xc   :  { %v52_v27 = vpack.c.bf16 %v48_v23, %v47_v22  ;;  %s208_s4 = sshll.u32 %s285_s1, 4  ;;  %s209_s4 = int_to_ptr.vmem [resolvable:$true] %s208_s4 }
  0x19   :  { %231 = vmatmul.msk.bf16.gmra.mxu0 %vm73_vm0, %v34_v24  ;;  %233 = vmatmul.msk.bf16.gmra.mxu2 %vm73_vm0, %v36_v25 }
  0x1a   :  { %243 = vmatmul.msk.bf16.gmra.mxu1 %vm73_vm0, %v50_v26  ;;  %245 = vmatmul.msk.bf16.gmra.mxu3 %vm73_vm0, %v52_v27 }
  0x86   :  { %v95_v30 = vpop.f32.mrf.mxu0 }
  0x87   :  { %v96_v31 = vadd.f32 %v257_v28, %v95_v30  ;;  %v152_v32 = vpop.f32.mrf.mxu1 }
  0x88   :  { %v153_v33 = vadd.f32 %v258_v29, %v152_v32 }
  0x89   :  { %v172_v34 = vmax.f32 %v96_v31, 0.0 }
  0x8a   :  { %v180_v35 = vmax.f32 %v153_v33, 0.0 }
  0x8c   :  { %v188_v36 = vadd.f32 %v180_v35, %v172_v34  ;;  %v105_v37 = vpop.f32.mrf.mxu2 }
  0x8d   :  { %v106_v38 = vadd.f32 %v257_v28, %v105_v37  ;;  %v162_v39 = vpop.f32.mrf.mxu3 }
  0x8e   :  { %196 = vst [vmem:[#allocation2] sm:$0xff] %v188_v36  ;;  %v163_v40 = vadd.f32 %v258_v29, %v162_v39  ;;  %v97_v41 = vpop.f32.mrf.mxu0 }
  0x8f   :  { %v176_v42 = vmax.f32 %v106_v38, 0.0  ;;  %v98_v43 = vadd.f32 %v257_v28, %v97_v41  ;;  %v154_v44 = vpop.f32.mrf.mxu1 }
  0x90   :  { %v184_v45 = vmax.f32 %v163_v40, 0.0  ;;  %v155_v46 = vadd.f32 %v258_v29, %v154_v44 }
  0x91   :  { %v173_v47 = vmax.f32 %v98_v43, 0.0 }
  0x92   :  { %v192_v48 = vadd.f32 %v184_v45, %v176_v42  ;;  %v181_v49 = vmax.f32 %v155_v46, 0.0 }
  0x94   :  { %200 = vst [vmem:[#allocation2 + $0x20] sm:$0xff] %v192_v48  ;;  %v189_v50 = vadd.f32 %v181_v49, %v173_v47  ;;  %v107_v51 = vpop.f32.mrf.mxu2 }
  0x95   :  { %v108_v52 = vadd.f32 %v257_v28, %v107_v51  ;;  %v164_v53 = vpop.f32.mrf.mxu3 }
  0x96   :  { %197 = vst [vmem:[#allocation2 + $0x8] sm:$0xff] %v189_v50  ;;  %v165_v54 = vadd.f32 %v258_v29, %v164_v53  ;;  %v100_v55 = vpop.f32.mrf.mxu0 }
  0x97   :  { %v177_v56 = vmax.f32 %v108_v52, 0.0  ;;  %v101_v57 = vadd.f32 %v257_v28, %v100_v55  ;;  %v157_v58 = vpop.f32.mrf.mxu1 }
  0x98   :  { %v185_v59 = vmax.f32 %v165_v54, 0.0  ;;  %v158_v60 = vadd.f32 %v258_v29, %v157_v58 }
  0x99   :  { %v174_v61 = vmax.f32 %v101_v57, 0.0 }
  0x9a   :  { %v193_v62 = vadd.f32 %v185_v59, %v177_v56  ;;  %v182_v63 = vmax.f32 %v158_v60, 0.0 }
  0x9c   :  { %201 = vst [vmem:[#allocation2 + $0x28] sm:$0xff] %v193_v62  ;;  %v190_v0 = vadd.f32 %v182_v63, %v174_v61  ;;  %v110_v1 = vpop.f32.mrf.mxu2 }
  0x9d   :  { %v111_v2 = vadd.f32 %v257_v28, %v110_v1  ;;  %v167_v3 = vpop.f32.mrf.mxu3 }
  0x9e   :  { %198 = vst [vmem:[#allocation2 + $0x10] sm:$0xff] %v190_v0  ;;  %v168_v4 = vadd.f32 %v258_v29, %v167_v3  ;;  %v102_v5 = vpop.f32.mrf.mxu0 }
  0x9f   :  { %v178_v6 = vmax.f32 %v111_v2, 0.0  ;;  %v103_v7 = vadd.f32 %v257_v28, %v102_v5  ;;  %v159_v8 = vpop.f32.mrf.mxu1 }
  0xa0   :  { %v186_v9 = vmax.f32 %v168_v4, 0.0  ;;  %v160_v10 = vadd.f32 %v258_v29, %v159_v8 }
  0xa1   :  { %v175_v11 = vmax.f32 %v103_v7, 0.0 }
  0xa2   :  { %v194_v12 = vadd.f32 %v186_v9, %v178_v6  ;;  %v183_v13 = vmax.f32 %v160_v10, 0.0 }
  0xa4   :  { %202 = vst [vmem:[#allocation2 + $0x30] sm:$0xff] %v194_v12  ;;  %v191_v14 = vadd.f32 %v183_v13, %v175_v11  ;;  %v112_v15 = vpop.f32.mrf.mxu2 }
  0xa5   :  { %v113_v16 = vadd.f32 %v257_v28, %v112_v15  ;;  %v169_v17 = vpop.f32.mrf.mxu3 }
  0xa6   :  { %199 = vst [vmem:[#allocation2 + $0x18] sm:$0xff] %v191_v14  ;;  %v170_v18 = vadd.f32 %v258_v29, %v169_v17 }
  0xa7   :  { %v179_v19 = vmax.f32 %v113_v16, 0.0 }
  0xa8   :  { %v187_v20 = vmax.f32 %v170_v18, 0.0 }
  0xaa   :  { %v195_v21 = vadd.f32 %v187_v20, %v179_v19 }
  0xac   :  { %203 = vst [vmem:[#allocation2 + $0x38] sm:$0xff] %v195_v21 }
  0xad   :  { %216 = dma.vmem_to_hbm [thread:$0]  %s209_s4, 1024, %s211_s13, [#allocation3], %s286_s14, %s286_s14, %s287_s15  }
  0xae   :  { %283 = dma.done.wait [#allocation3], 1024  }
  0xaf   :  { %284 = vsyncadd [#allocation3], 4294966272 }
  0xb0   :  { %221 = vsyncpa [#allocation3], 1 }

</bundles_post_ra>
